<compile_context>
chip_gen: v7x
topology: tpu7x:2x2x1
jax: 0.10.0
libtpu: 0.0.40
codegen_flags: <defaults>
</compile_context>

<pallas_src>
import numpy as np
import jax
import jax.numpy as jnp
from jax.experimental import pallas as pl
from jax.experimental.pallas import tpu as pltpu


# ----------------------------------------------------------------------------
# Fused kernel: softmax gate + mixture mean/logsigma + sample + LSTM step,
# iterated over grid=(T,) with h/c carried in VMEM scratch.
# ----------------------------------------------------------------------------
def make_kernel(num_layers, num_linears, state_size, hidden_size, out_lanes):
    NL, S, H, L = num_linears, state_size, hidden_size, num_layers

    def kernel(step_ref, h0_ref, c0_ref, wcat_ref, mix_ref, eye_ref, fcn_ref,
               *rest):
        lstm_refs = rest[:L]
        out_ref = rest[L]
        h_sc = rest[L + 1]
        c_sc = rest[L + 2]

        t = pl.program_id(0)

        # Initialize the carried LSTM state from the provided (L, B, H) inputs.
        @pl.when(t == 0)
        def _():
            h_sc[...] = h0_ref[...]
            c_sc[...] = c0_ref[...]

        row = step_ref[0]                 # (B, 128): [ eps | state | ext | pad ]
        eps = row[:, :S]                  # (B, S)

        # ---- weight_map = Softmax(Linear(hidden -> NL))(h_last) -------------
        h_last = h_sc[L - 1]                                          # (B, H)
        logits = jnp.dot(h_last, fcn_ref[:H, :],
                         preferred_element_type=jnp.float32) + fcn_ref[H:H + 1, :]
        logits = logits - jnp.max(logits, axis=-1, keepdims=True)
        ex = jnp.exp(logits)
        w = ex * pl.reciprocal(jnp.sum(ex, axis=-1, keepdims=True))   # (B, NL)

        # ---- all experts in ONE lane-dense MXU matmul ------------------------
        # w_cat is zero-padded to 128 input rows so the whole step row feeds it
        # directly (eps / pad lanes hit zero rows) -> no x_cat lane extraction.
        expert = jnp.dot(row, wcat_ref[...],
                         preferred_element_type=jnp.float32)          # (B, NL*S)

        # One matmul gives [ w repeated per expert | weighted bias | logsigma ].
        mixed = jnp.dot(w, mix_ref[...],
                        preferred_element_type=jnp.float32)           # (B, NL*S+2S)
        w_rep = mixed[:, :NL * S]                                     # (B, NL*S)
        bias = mixed[:, NL * S:NL * S + S]                            # (B, S)
        logsig = mixed[:, NL * S + S:]                                # (B, S)

        # mu = sum_k w_k * expert_k + sum_k w_k * b_k  (stacked-identity reduce)
        mu = bias + jnp.dot(w_rep * expert, eye_ref[...],
                            preferred_element_type=jnp.float32)       # (B, S)
        sample = mu + jnp.exp(logsig) * eps                           # reparam.

        # ---- single-step LSTM stack (gates fused along 4H = 128 lanes) ------
        layer_in = sample
        new_h, new_c = [], []
        for l in range(L):
            slab = lstm_refs[l]                 # (kin + H + 1, 4H) = [Wih;Whh;b]
            kin = S if l == 0 else H
            h_prev = h_sc[l]
            c_prev = c_sc[l]
            gates = (jnp.dot(layer_in, slab[:kin, :],
                             preferred_element_type=jnp.float32)
                     + jnp.dot(h_prev, slab[kin:kin + H, :],
                               preferred_element_type=jnp.float32)
                     + slab[kin + H:kin + H + 1, :])                  # (B, 4H)
            sig = jax.nn.sigmoid(gates)         # one EUP pass over all 128 lanes
            th = jnp.tanh(gates)                # one EUP pass over all 128 lanes
            i_g = sig[:, 0 * H:1 * H]           # PyTorch gate order: i | f | g | o
            f_g = sig[:, 1 * H:2 * H]
            g_g = th[:, 2 * H:3 * H]
            o_g = sig[:, 3 * H:4 * H]
            c_new = f_g * c_prev + i_g * g_g
            h_new = o_g * jnp.tanh(c_new)
            h_sc[l] = h_new
            c_sc[l] = c_new
            new_h.append(h_new)
            new_c.append(c_new)
            layer_in = h_new

        # ---- single lane-dense packed output store ---------------------------
        pieces = [w, mu, logsig, sample] + new_h + new_c
        used = NL + 3 * S + 2 * L * H
        pad = out_lanes - used
        if pad:
            pieces.append(jnp.zeros((w.shape[0], pad), jnp.float32))
        out_ref[0] = jnp.concatenate(pieces, axis=-1)

    return kernel


# ----------------------------------------------------------------------------
# Parameters: torch-like layout + packed lane-dense slabs for the kernel
# ----------------------------------------------------------------------------
def init_params(key, input_size, state_size, num_linears, num_layers, hidden_size):
    keys = jax.random.split(key, 8 + num_layers)
    s = 0.1
    p = {
        "w_fcn": s * jax.random.normal(keys[0], (hidden_size, num_linears), jnp.float32),
        "b_fcn": s * jax.random.normal(keys[1], (1, num_linears), jnp.float32),
        "w_state": s * jax.random.normal(keys[2], (num_linears, state_size, state_size), jnp.float32),
        "b_state": s * jax.random.normal(keys[3], (num_linears, 1, state_size), jnp.float32),
        "w_in": s * jax.random.normal(keys[4], (num_linears, input_size, state_size), jnp.float32),
        "b_in": s * jax.random.normal(keys[5], (num_linears, 1, state_size), jnp.float32),
        "logsigma": jax.random.normal(keys[6], (num_linears, state_size), jnp.float32),
        # Present in the torch module but unused in forward():
        "weight_hidden_state0": jnp.zeros((hidden_size,), jnp.float32),
    }
    w_ih, w_hh, b = [], [], []
    for l in range(num_layers):
        k = jax.random.split(keys[8 + l], 3)
        kin = state_size if l == 0 else hidden_size
        # Fused gate layout along lanes: [i | f | g | o], each H wide.
        w_ih.append(s * jax.random.normal(k[0], (kin, 4 * hidden_size), jnp.float32))
        w_hh.append(s * jax.random.normal(k[1], (hidden_size, 4 * hidden_size), jnp.float32))
        b.append(s * jax.random.normal(k[2], (1, 4 * hidden_size), jnp.float32))  # b_ih + b_hh fused
    p["lstm_w_ih"], p["lstm_w_hh"], p["lstm_b"] = w_ih, w_hh, b
    return p


IN_LANES = 128  # padded per-step input row: [eps(S) | state(S) | ext(I) | pad]


def pack_params(p):
    NL, S, _ = p["w_state"].shape
    I = p["w_in"].shape[1]
    H = p["w_fcn"].shape[0]
    L = len(p["lstm_w_ih"])
    assert 2 * S + I <= IN_LANES

    # Experts stacked along output lanes: expert k lives in lanes [k*S, (k+1)*S).
    w_cat = jnp.concatenate([p["w_state"], p["w_in"]], axis=1)          # (NL, S+I, S)
    w_cat = jnp.transpose(w_cat, (1, 0, 2)).reshape(S + I, NL * S)      # (S+I, NL*S)
    # Zero-pad input rows to 128 and align them with the packed step-row lanes
    # ([eps | state | ext]): the eps/pad lanes hit zero rows.
    w_cat_pad = jnp.zeros((IN_LANES, NL * S), jnp.float32)
    w_cat_pad = w_cat_pad.at[S:2 * S + I, :].set(w_cat)                 # (128, NL*S)

    # One (NL, NL*S + 2S) table:  w @ tab -> [ w_rep | weighted bias | logsigma ]
    expand = jnp.repeat(jnp.eye(NL, dtype=jnp.float32), S, axis=1)      # (NL, NL*S)
    b_sum = p["b_state"][:, 0, :] + p["b_in"][:, 0, :]                  # (NL, S)
    mix_tab = jnp.concatenate([expand, b_sum, p["logsigma"]], axis=-1)  # (NL, NL*S+2S)

    # Stacked identities: (B, NL*S) @ (NL*S, S) sums the per-expert chunks.
    stack_eye = jnp.tile(jnp.eye(S, dtype=jnp.float32), (NL, 1))        # (NL*S, S)

    # Gate FCN weight + bias in one slab: rows [0:H) = W, row H = b.
    fcn = jnp.concatenate([p["w_fcn"], p["b_fcn"]], axis=0)             # (H+1, NL)

    # One slab per LSTM layer: [W_ih ; W_hh ; b] with 4H = 128 output lanes.
    lstm_slabs = []
    for l in range(L):
        lstm_slabs.append(jnp.concatenate(
            [p["lstm_w_ih"][l], p["lstm_w_hh"][l], p["lstm_b"][l]], axis=0))

    return {"w_cat_pad": w_cat_pad, "mix_tab": mix_tab, "stack_eye": stack_eye,
            "fcn": fcn, "lstm_slabs": lstm_slabs,
            "dims": (NL, S, I, H, L)}


# ----------------------------------------------------------------------------
# Rollout wrapper: one pallas_call, grid over T time steps
# ----------------------------------------------------------------------------
def combinational_linears_rollout(packed, state_seq, ext_seq, lstm_state, eps_seq):
    """Applies the CombinationalLinears forward step to each (state[t], ext[t])
    with the LSTM state carried across steps (weights stay VMEM resident).

    Returns (mu, var_diag, sample, (h_final, c_final), weight_map) with
    per-step leading T axis; var_diag is the diagonal of next_cov."""
    NL, S, I, H, L = packed["dims"]
    h0, c0 = lstm_state
    T, B, _ = state_seq.shape

    used_lanes = NL + 3 * S + 2 * L * H
    OUT_LANES = ((used_lanes + 127) // 128) * 128

    # Pack per-step streamed inputs into one lane-padded slab (1 DMA / step).
    step_in = jnp.concatenate(
        [eps_seq, state_seq, ext_seq,
         jnp.zeros((T, B, IN_LANES - 2 * S - I), jnp.float32)], axis=-1)  # (T,B,128)

    args = [step_in, h0, c0, packed["w_cat_pad"], packed["mix_tab"],
            packed["stack_eye"], packed["fcn"]] + list(packed["lstm_slabs"])

    def _const_spec(shape):          # whole array, DMA'd once (constant block)
        nd = len(shape)
        return pl.BlockSpec(shape, lambda t, _nd=nd: (0,) * _nd)

    in_specs = ([pl.BlockSpec((1, B, IN_LANES), lambda t: (t, 0, 0))]
                + [_const_spec(a.shape) for a in args[1:]])
    out_specs = pl.BlockSpec((1, B, OUT_LANES), lambda t: (t, 0, 0))
    out_shape = jax.ShapeDtypeStruct((T, B, OUT_LANES), jnp.float32)

    kernel = make_kernel(L, NL, S, H, OUT_LANES)
    packed_out = pl.pallas_call(
        kernel,
        grid=(T,),
        in_specs=in_specs,
        out_specs=out_specs,
        out_shape=out_shape,
        scratch_shapes=[pltpu.VMEM((L, B, H), jnp.float32),   # carried h
                        pltpu.VMEM((L, B, H), jnp.float32)],  # carried c
        compiler_params=pltpu.CompilerParams(dimension_semantics=("arbitrary",)),
    )(*args)

    # Cheap XLA slices split the packed lane-dense output slab.
    o = 0
    weight_map = packed_out[:, :, o:o + NL]; o += NL
    mu = packed_out[:, :, o:o + S]; o += S
    logsig = packed_out[:, :, o:o + S]; o += S
    sample = packed_out[:, :, o:o + S]; o += S
    h_seq = packed_out[:, :, o:o + L * H]; o += L * H
    c_seq = packed_out[:, :, o:o + L * H]

    h_final = jnp.transpose(h_seq[-1].reshape(B, L, H), (1, 0, 2))
    c_final = jnp.transpose(c_seq[-1].reshape(B, L, H), (1, 0, 2))
    # TODO(synk): torch.distributions.MultivariateNormal has no Pallas
    # equivalent; return (mu, diagonal variance) instead of a dense (B,S,S)
    # covariance / distribution object.
    var_diag = jnp.exp(2.0 * logsig)
    return mu, var_diag, sample, (h_final, c_final), weight_map


# ----------------------------------------------------------------------------
# Pure-JAX reference (torch-like parameters, step-by-step)
# ----------------------------------------------------------------------------
def reference_rollout(params, state_seq, ext_seq, h0, c0, eps_seq):
    hp = lambda a, b: jnp.dot(a, b, precision=jax.lax.Precision.HIGHEST)
    L, _, H = h0.shape
    T = state_seq.shape[0]
    NL = params["w_state"].shape[0]
    h, c = h0, c0
    mus, logsigs, samples, wmaps = [], [], [], []
    for t in range(T):
        state, ext, eps = state_seq[t], ext_seq[t], eps_seq[t]
        w = jax.nn.softmax(hp(h[-1], params["w_fcn"]) + params["b_fcn"][0], axis=-1)
        mu = jnp.zeros_like(state)
        for k in range(NL):
            mu = mu + w[:, k:k + 1] * (hp(state, params["w_state"][k]) + params["b_state"][k, 0]
                                       + hp(ext, params["w_in"][k]) + params["b_in"][k, 0])
        logsig = hp(w, params["logsigma"])
        sample = mu + jnp.exp(logsig) * eps
        layer_in = sample
        nh, nc = [], []
        for l in range(L):
            gates = (hp(layer_in, params["lstm_w_ih"][l]) + hp(h[l], params["lstm_w_hh"][l])
                     + params["lstm_b"][l])
            i = jax.nn.sigmoid(gates[:, 0 * H:1 * H])
            f = jax.nn.sigmoid(gates[:, 1 * H:2 * H])
            g = jnp.tanh(gates[:, 2 * H:3 * H])
            o = jax.nn.sigmoid(gates[:, 3 * H:4 * H])
            c_new = f * c[l] + i * g
            h_new = o * jnp.tanh(c_new)
            nh.append(h_new); nc.append(c_new)
            layer_in = h_new
        h, c = jnp.stack(nh), jnp.stack(nc)
        mus.append(mu); logsigs.append(logsig); samples.append(sample); wmaps.append(w)
    return (jnp.stack(mus), jnp.stack(logsigs), jnp.stack(samples),
            jnp.stack(wmaps), h, c)


if __name__ == "__main__":
    B, T = 4, 8
    input_size, state_size = 16, 32
    num_linears, num_layers, hidden_size = 8, 1, 32

    key = jax.random.PRNGKey(0)
    kp, ks, ke, kh, kc, kn = jax.random.split(key, 6)
    params = init_params(kp, input_size, state_size, num_linears, num_layers, hidden_size)
    packed = pack_params(params)

    state_seq = jax.random.normal(ks, (T, B, state_size), jnp.float32)
    ext_seq = jax.random.normal(ke, (T, B, input_size), jnp.float32)
    eps_seq = jax.random.normal(kn, (T, B, state_size), jnp.float32)   # reparam. noise
    h0 = 0.1 * jax.random.normal(kh, (num_layers, B, hidden_size), jnp.float32)
    c0 = 0.1 * jax.random.normal(kc, (num_layers, B, hidden_size), jnp.float32)

    out = combinational_linears_rollout(packed, state_seq, ext_seq, (h0, c0), eps_seq)
    mu, var_diag, sample, (h_fin, c_fin), weight_map = jax.block_until_ready(out)

    ref_mu, ref_logsig, ref_sample, ref_w, ref_h, ref_c = reference_rollout(
        params, state_seq, ext_seq, h0, c0, eps_seq)

    np.testing.assert_allclose(np.asarray(mu), np.asarray(ref_mu), rtol=1e-4, atol=1e-4)
    np.testing.assert_allclose(np.asarray(var_diag), np.asarray(jnp.exp(2.0 * ref_logsig)),
                               rtol=1e-4, atol=1e-4)
    np.testing.assert_allclose(np.asarray(sample), np.asarray(ref_sample), rtol=1e-4, atol=1e-4)
    np.testing.assert_allclose(np.asarray(weight_map), np.asarray(ref_w), rtol=1e-4, atol=1e-4)
    np.testing.assert_allclose(np.asarray(h_fin), np.asarray(ref_h), rtol=1e-4, atol=1e-4)
    np.testing.assert_allclose(np.asarray(c_fin), np.asarray(ref_c), rtol=1e-4, atol=1e-4)

    print("KERNEL_OK")
</pallas_src>

<mosaic_0001>
module attributes {stable_mosaic.version = 11 : i64} {
  func.func @kernel(%arg0: i32, %arg1: memref<1x4x128xf32, #tpu.memory_space<vmem>>, %arg2: memref<1x4x32xf32, #tpu.memory_space<vmem>>, %arg3: memref<1x4x32xf32, #tpu.memory_space<vmem>>, %arg4: memref<128x256xf32, #tpu.memory_space<vmem>>, %arg5: memref<8x320xf32, #tpu.memory_space<vmem>>, %arg6: memref<256x32xf32, #tpu.memory_space<vmem>>, %arg7: memref<33x8xf32, #tpu.memory_space<vmem>>, %arg8: memref<65x128xf32, #tpu.memory_space<vmem>>, %arg9: memref<1x4x256xf32, #tpu.memory_space<vmem>>, %arg10: memref<1x4x32xf32, #tpu.memory_space<vmem>>, %arg11: memref<1x4x32xf32, #tpu.memory_space<vmem>>) attributes {dimension_semantics = [#tpu.dimension_semantics<arbitrary>], iteration_bounds = array<i64: 8>, scalar_prefetch = 0 : i64, scratch_operands = 2 : i64, tpu.core_type = #tpu.core_type<tc>, window_params = [{transform_indices = @transform_0, window_bounds = array<i64: 1, 4, 128>}, {pipeline_mode = #tpu.pipeline_mode<synchronous>, transform_indices = @transform_1, window_bounds = array<i64: 1, 4, 32>}, {pipeline_mode = #tpu.pipeline_mode<synchronous>, transform_indices = @transform_2, window_bounds = array<i64: 1, 4, 32>}, {pipeline_mode = #tpu.pipeline_mode<synchronous>, transform_indices = @transform_3, window_bounds = array<i64: 128, 256>}, {pipeline_mode = #tpu.pipeline_mode<synchronous>, transform_indices = @transform_4, window_bounds = array<i64: 8, 320>}, {pipeline_mode = #tpu.pipeline_mode<synchronous>, transform_indices = @transform_5, window_bounds = array<i64: 256, 32>}, {pipeline_mode = #tpu.pipeline_mode<synchronous>, transform_indices = @transform_6, window_bounds = array<i64: 33, 8>}, {pipeline_mode = #tpu.pipeline_mode<synchronous>, transform_indices = @transform_7, window_bounds = array<i64: 65, 128>}, {transform_indices = @transform_8, window_bounds = array<i64: 1, 4, 256>}]} {
    %c0_i32 = arith.constant 0 : i32
    %0 = arith.cmpi eq, %arg0, %c0_i32 : i32
    %1 = arith.extui %0 : i1 to i32
    %c0_i32_0 = arith.constant 0 : i32
    %2 = arith.cmpi ne, %1, %c0_i32_0 : i32
    scf.if %2 {
      %c0_44 = arith.constant 0 : index
      %c0_45 = arith.constant 0 : index
      %c0_46 = arith.constant 0 : index
      %75 = vector.load %arg2[%c0_44, %c0_45, %c0_46] : memref<1x4x32xf32, #tpu.memory_space<vmem>>, vector<1x4x32xf32>
      %c0_47 = arith.constant 0 : index
      %c0_48 = arith.constant 0 : index
      %c0_49 = arith.constant 0 : index
      %76 = vector.load %arg10[%c0_47, %c0_48, %c0_49] : memref<1x4x32xf32, #tpu.memory_space<vmem>>, vector<1x4x32xf32>
      tpu.vector_store %arg10[%c0_47, %c0_48, %c0_49], %75 {strides = array<i32>} : memref<1x4x32xf32, #tpu.memory_space<vmem>>, vector<1x4x32xf32>,
      %c0_50 = arith.constant 0 : index
      %c0_51 = arith.constant 0 : index
      %c0_52 = arith.constant 0 : index
      %77 = vector.load %arg3[%c0_50, %c0_51, %c0_52] : memref<1x4x32xf32, #tpu.memory_space<vmem>>, vector<1x4x32xf32>
      %c0_53 = arith.constant 0 : index
      %c0_54 = arith.constant 0 : index
      %c0_55 = arith.constant 0 : index
      %78 = vector.load %arg11[%c0_53, %c0_54, %c0_55] : memref<1x4x32xf32, #tpu.memory_space<vmem>>, vector<1x4x32xf32>
      tpu.vector_store %arg11[%c0_53, %c0_54, %c0_55], %77 {strides = array<i32>} : memref<1x4x32xf32, #tpu.memory_space<vmem>>, vector<1x4x32xf32>,
    } else {
    }
    %c0 = arith.constant 0 : index
    %c0_1 = arith.constant 0 : index
    %c0_2 = arith.constant 0 : index
    %3 = vector.load %arg1[%c0, %c0_1, %c0_2] : memref<1x4x128xf32, #tpu.memory_space<vmem>>, vector<1x4x128xf32>
    %4 = vector.shape_cast %3 : vector<1x4x128xf32> to vector<4x128xf32>
    %5 = vector.extract_strided_slice %4 {offsets = [0, 0], sizes = [4, 32], strides = [1, 1]} : vector<4x128xf32> to vector<4x32xf32>
    %c0_3 = arith.constant 0 : index
    %c0_4 = arith.constant 0 : index
    %c0_5 = arith.constant 0 : index
    %6 = vector.load %arg10[%c0_3, %c0_4, %c0_5] : memref<1x4x32xf32, #tpu.memory_space<vmem>>, vector<1x4x32xf32>
    %7 = vector.shape_cast %6 : vector<1x4x32xf32> to vector<4x32xf32>
    %c0_6 = arith.constant 0 : index
    %c0_7 = arith.constant 0 : index
    %8 = vector.load %arg7[%c0_6, %c0_7] : memref<33x8xf32, #tpu.memory_space<vmem>>, vector<32x8xf32>
    %cst = arith.constant dense<0.000000e+00> : vector<4x8xf32>
    %9 = tpu.matmul %7, %8, %cst {dimension_numbers = #tpu.dot_dimension_numbers<[1], [0], [0], [1], [0, 0, 1, 1], [], []>} : vector<4x32xf32>, vector<32x8xf32>, vector<4x8xf32> -> vector<4x8xf32>
    %c32 = arith.constant 32 : index
    %c0_8 = arith.constant 0 : index
    %10 = vector.load %arg7[%c32, %c0_8] : memref<33x8xf32, #tpu.memory_space<vmem>>, vector<1x8xf32>
    %11 = vector.broadcast %10 : vector<1x8xf32> to vector<4x8xf32>
    %12 = arith.addf %9, %11 : vector<4x8xf32>
    %cst_9 = arith.constant dense<0xFF800000> : vector<4xf32>
    %13 = vector.multi_reduction <maximumf>, %12, %cst_9 [1] : vector<4x8xf32> to vector<4xf32>
    %14 = vector.shape_cast %13 : vector<4xf32> to vector<4x1xf32>
    %15 = vector.broadcast %14 : vector<4x1xf32> to vector<4x8xf32>
    %16 = arith.subf %12, %15 : vector<4x8xf32>
    %17 = math.exp %16 : vector<4x8xf32>
    %cst_10 = arith.constant dense<0.000000e+00> : vector<4xf32>
    %18 = vector.multi_reduction <add>, %17, %cst_10 [1] : vector<4x8xf32> to vector<4xf32>
    %19 = vector.shape_cast %18 : vector<4xf32> to vector<4x1xf32>
    %20 = tpu.reciprocal %19 : vector<4x1xf32> -> vector<4x1xf32>
    %21 = vector.broadcast %20 : vector<4x1xf32> to vector<4x8xf32>
    %22 = arith.mulf %17, %21 : vector<4x8xf32>
    %c0_11 = arith.constant 0 : index
    %c0_12 = arith.constant 0 : index
    %23 = vector.load %arg4[%c0_11, %c0_12] : memref<128x256xf32, #tpu.memory_space<vmem>>, vector<128x256xf32>
    %cst_13 = arith.constant dense<0.000000e+00> : vector<4x256xf32>
    %24 = tpu.matmul %4, %23, %cst_13 {dimension_numbers = #tpu.dot_dimension_numbers<[1], [0], [0], [1], [0, 0, 1, 1], [], []>} : vector<4x128xf32>, vector<128x256xf32>, vector<4x256xf32> -> vector<4x256xf32>
    %c0_14 = arith.constant 0 : index
    %c0_15 = arith.constant 0 : index
    %25 = vector.load %arg5[%c0_14, %c0_15] : memref<8x320xf32, #tpu.memory_space<vmem>>, vector<8x320xf32>
    %cst_16 = arith.constant dense<0.000000e+00> : vector<4x320xf32>
    %26 = tpu.matmul %22, %25, %cst_16 {dimension_numbers = #tpu.dot_dimension_numbers<[1], [0], [0], [1], [0, 0, 1, 1], [], []>} : vector<4x8xf32>, vector<8x320xf32>, vector<4x320xf32> -> vector<4x320xf32>
    %27 = vector.extract_strided_slice %26 {offsets = [0, 0], sizes = [4, 256], strides = [1, 1]} : vector<4x320xf32> to vector<4x256xf32>
    %28 = vector.extract_strided_slice %26 {offsets = [0, 256], sizes = [4, 32], strides = [1, 1]} : vector<4x320xf32> to vector<4x32xf32>
    %29 = vector.extract_strided_slice %26 {offsets = [0, 288], sizes = [4, 32], strides = [1, 1]} : vector<4x320xf32> to vector<4x32xf32>
    %30 = arith.mulf %27, %24 : vector<4x256xf32>
    %c0_17 = arith.constant 0 : index
    %c0_18 = arith.constant 0 : index
    %31 = vector.load %arg6[%c0_17, %c0_18] : memref<256x32xf32, #tpu.memory_space<vmem>>, vector<256x32xf32>
    %cst_19 = arith.constant dense<0.000000e+00> : vector<4x32xf32>
    %32 = tpu.matmul %30, %31, %cst_19 {dimension_numbers = #tpu.dot_dimension_numbers<[1], [0], [0], [1], [0, 0, 1, 1], [], []>} : vector<4x256xf32>, vector<256x32xf32>, vector<4x32xf32> -> vector<4x32xf32>
    %33 = arith.addf %28, %32 : vector<4x32xf32>
    %34 = math.exp %29 : vector<4x32xf32>
    %35 = arith.mulf %34, %5 : vector<4x32xf32>
    %36 = arith.addf %33, %35 : vector<4x32xf32>
    %c0_20 = arith.constant 0 : index
    %c0_21 = arith.constant 0 : index
    %c0_22 = arith.constant 0 : index
    %37 = vector.load %arg10[%c0_20, %c0_21, %c0_22] : memref<1x4x32xf32, #tpu.memory_space<vmem>>, vector<1x4x32xf32>
    %38 = vector.shape_cast %37 : vector<1x4x32xf32> to vector<4x32xf32>
    %c0_23 = arith.constant 0 : index
    %c0_24 = arith.constant 0 : index
    %c0_25 = arith.constant 0 : index
    %39 = vector.load %arg11[%c0_23, %c0_24, %c0_25] : memref<1x4x32xf32, #tpu.memory_space<vmem>>, vector<1x4x32xf32>
    %40 = vector.shape_cast %39 : vector<1x4x32xf32> to vector<4x32xf32>
    %c0_26 = arith.constant 0 : index
    %c0_27 = arith.constant 0 : index
    %41 = vector.load %arg8[%c0_26, %c0_27] : memref<65x128xf32, #tpu.memory_space<vmem>>, vector<32x128xf32>
    %cst_28 = arith.constant dense<0.000000e+00> : vector<4x128xf32>
    %42 = tpu.matmul %36, %41, %cst_28 {dimension_numbers = #tpu.dot_dimension_numbers<[1], [0], [0], [1], [0, 0, 1, 1], [], []>} : vector<4x32xf32>, vector<32x128xf32>, vector<4x128xf32> -> vector<4x128xf32>
    %c32_29 = arith.constant 32 : index
    %c0_30 = arith.constant 0 : index
    %43 = vector.load %arg8[%c32_29, %c0_30] : memref<65x128xf32, #tpu.memory_space<vmem>>, vector<32x128xf32>
    %cst_31 = arith.constant dense<0.000000e+00> : vector<4x128xf32>
    %44 = tpu.matmul %38, %43, %cst_31 {dimension_numbers = #tpu.dot_dimension_numbers<[1], [0], [0], [1], [0, 0, 1, 1], [], []>} : vector<4x32xf32>, vector<32x128xf32>, vector<4x128xf32> -> vector<4x128xf32>
    %45 = arith.addf %42, %44 : vector<4x128xf32>
    %c64 = arith.constant 64 : index
    %c0_32 = arith.constant 0 : index
    %46 = vector.load %arg8[%c64, %c0_32] : memref<65x128xf32, #tpu.memory_space<vmem>>, vector<1x128xf32>
    %47 = vector.broadcast %46 : vector<1x128xf32> to vector<4x128xf32>
    %48 = arith.addf %45, %47 : vector<4x128xf32>
    %49 = arith.negf %48 : vector<4x128xf32>
    %50 = math.exp %49 : vector<4x128xf32>
    %cst_33 = arith.constant 1.000000e+00 : f32
    %51 = vector.broadcast %cst_33 : f32 to vector<4x128xf32>
    %52 = arith.addf %51, %50 : vector<4x128xf32>
    %53 = arith.divf %51, %52 : vector<4x128xf32>
    %54 = math.tanh %48 : vector<4x128xf32>
    %55 = vector.extract_strided_slice %53 {offsets = [0, 0], sizes = [4, 32], strides = [1, 1]} : vector<4x128xf32> to vector<4x32xf32>
    %56 = vector.extract_strided_slice %53 {offsets = [0, 32], sizes = [4, 32], strides = [1, 1]} : vector<4x128xf32> to vector<4x32xf32>
    %57 = vector.extract_strided_slice %54 {offsets = [0, 64], sizes = [4, 32], strides = [1, 1]} : vector<4x128xf32> to vector<4x32xf32>
    %58 = vector.extract_strided_slice %53 {offsets = [0, 96], sizes = [4, 32], strides = [1, 1]} : vector<4x128xf32> to vector<4x32xf32>
    %59 = arith.mulf %56, %40 : vector<4x32xf32>
    %60 = arith.mulf %55, %57 : vector<4x32xf32>
    %61 = arith.addf %59, %60 : vector<4x32xf32>
    %62 = math.tanh %61 : vector<4x32xf32>
    %63 = arith.mulf %58, %62 : vector<4x32xf32>
    %c0_34 = arith.constant 0 : index
    %c0_35 = arith.constant 0 : index
    %c0_36 = arith.constant 0 : index
    %64 = vector.load %arg10[%c0_34, %c0_35, %c0_36] : memref<1x4x32xf32, #tpu.memory_space<vmem>>, vector<1x4x32xf32>
    %65 = vector.shape_cast %64 : vector<1x4x32xf32> to vector<4x32xf32>
    %66 = vector.shape_cast %63 : vector<4x32xf32> to vector<1x4x32xf32>
    tpu.vector_store %arg10[%c0_34, %c0_35, %c0_36], %66 {strides = array<i32>} : memref<1x4x32xf32, #tpu.memory_space<vmem>>, vector<1x4x32xf32>,
    %c0_37 = arith.constant 0 : index
    %c0_38 = arith.constant 0 : index
    %c0_39 = arith.constant 0 : index
    %67 = vector.load %arg11[%c0_37, %c0_38, %c0_39] : memref<1x4x32xf32, #tpu.memory_space<vmem>>, vector<1x4x32xf32>
    %68 = vector.shape_cast %67 : vector<1x4x32xf32> to vector<4x32xf32>
    %69 = vector.shape_cast %61 : vector<4x32xf32> to vector<1x4x32xf32>
    tpu.vector_store %arg11[%c0_37, %c0_38, %c0_39], %69 {strides = array<i32>} : memref<1x4x32xf32, #tpu.memory_space<vmem>>, vector<1x4x32xf32>,
    %cst_40 = arith.constant 0.000000e+00 : f32
    %70 = vector.broadcast %cst_40 : f32 to vector<4x88xf32>
    %71 = tpu.concatenate %22, %33, %29, %36, %63, %61, %70 in 1 : vector<4x8xf32>, vector<4x32xf32>, vector<4x32xf32>, vector<4x32xf32>, vector<4x32xf32>, vector<4x32xf32>, vector<4x88xf32> -> vector<4x256xf32>
    %c0_41 = arith.constant 0 : index
    %c0_42 = arith.constant 0 : index
    %c0_43 = arith.constant 0 : index
    %72 = vector.load %arg9[%c0_41, %c0_42, %c0_43] : memref<1x4x256xf32, #tpu.memory_space<vmem>>, vector<1x4x256xf32>
    %73 = vector.shape_cast %72 : vector<1x4x256xf32> to vector<4x256xf32>
    %74 = vector.shape_cast %71 : vector<4x256xf32> to vector<1x4x256xf32>
    tpu.vector_store %arg9[%c0_41, %c0_42, %c0_43], %74 {strides = array<i32>} : memref<1x4x256xf32, #tpu.memory_space<vmem>>, vector<1x4x256xf32>,
    return
  }
  func.func @transform_0(%arg0: i32) -> (i32, i32, i32) {
    %c0_i32 = arith.constant 0 : i32
    %c0_i32_0 = arith.constant 0 : i32
    %c0_i32_1 = arith.constant 0 : i32
    return %arg0, %c0_i32, %c0_i32_0 : i32, i32, i32
  }
  func.func @transform_1(%arg0: i32) -> (i32, i32, i32) {
    %c0_i32 = arith.constant 0 : i32
    %c0_i32_0 = arith.constant 0 : i32
    %c0_i32_1 = arith.constant 0 : i32
    %c0_i32_2 = arith.constant 0 : i32
    return %c0_i32, %c0_i32_0, %c0_i32_1 : i32, i32, i32
  }
  func.func @transform_2(%arg0: i32) -> (i32, i32, i32) {
    %c0_i32 = arith.constant 0 : i32
    %c0_i32_0 = arith.constant 0 : i32
    %c0_i32_1 = arith.constant 0 : i32
    %c0_i32_2 = arith.constant 0 : i32
    return %c0_i32, %c0_i32_0, %c0_i32_1 : i32, i32, i32
  }
  func.func @transform_3(%arg0: i32) -> (i32, i32) {
    %c0_i32 = arith.constant 0 : i32
    %c0_i32_0 = arith.constant 0 : i32
    %c0_i32_1 = arith.constant 0 : i32
    return %c0_i32, %c0_i32_0 : i32, i32
  }
  func.func @transform_4(%arg0: i32) -> (i32, i32) {
    %c0_i32 = arith.constant 0 : i32
    %c0_i32_0 = arith.constant 0 : i32
    %c0_i32_1 = arith.constant 0 : i32
    return %c0_i32, %c0_i32_0 : i32, i32
  }
  func.func @transform_5(%arg0: i32) -> (i32, i32) {
    %c0_i32 = arith.constant 0 : i32
    %c0_i32_0 = arith.constant 0 : i32
    %c0_i32_1 = arith.constant 0 : i32
    return %c0_i32, %c0_i32_0 : i32, i32
  }
  func.func @transform_6(%arg0: i32) -> (i32, i32) {
    %c0_i32 = arith.constant 0 : i32
    %c0_i32_0 = arith.constant 0 : i32
    %c0_i32_1 = arith.constant 0 : i32
    return %c0_i32, %c0_i32_0 : i32, i32
  }
  func.func @transform_7(%arg0: i32) -> (i32, i32) {
    %c0_i32 = arith.constant 0 : i32
    %c0_i32_0 = arith.constant 0 : i32
    %c0_i32_1 = arith.constant 0 : i32
    return %c0_i32, %c0_i32_0 : i32, i32
  }
  func.func @transform_8(%arg0: i32) -> (i32, i32, i32) {
    %c0_i32 = arith.constant 0 : i32
    %c0_i32_0 = arith.constant 0 : i32
    %c0_i32_1 = arith.constant 0 : i32
    return %arg0, %c0_i32, %c0_i32_0 : i32, i32, i32
  }
}

</mosaic_0001>

<bundles_post_ra>
// kernel: tpu_custom_call.1
= control target key start
LH: loop header
LB: loop body
LE: loop exit
PB: predicated region body
PF: predicated region fallthrough
CT: control target
= control target key end

     0   :  { %13 = vsyncpa [#allocation5], 0  ;;  %s1962_s0 = inlined_call_operand.vmem [shape: f32[8,4,128], index: 0, kind: input, shape index: {}]   ;;  %s1963_s1 = inlined_call_operand.vmem [shape: f32[1,4,32], index: 1, kind: input, shape index: {}]   ;;  %s1964_s2 = inlined_call_operand.vmem [shape: f32[1,4,32], index: 2, kind: input, shape index: {}]   ;;  %s1965_s3 = inlined_call_operand.vmem [shape: f32[128,256], index: 3, kind: input, shape index: {}]   ;;  %s1966_s4 = inlined_call_operand.hbm [shape: f32[8,320], index: 4, kind: input, shape index: {}]   ;;  %s1967_s5 = inlined_call_operand.vmem [shape: f32[256,32], index: 5, kind: input, shape index: {}]   ;;  %s1968_s6 = inlined_call_operand.vmem [shape: f32[33,8], index: 6, kind: input, shape index: {}]   ;;  %s1969_s7 = inlined_call_operand.vmem [shape: f32[65,128], index: 7, kind: input, shape index: {}]   ;;  %s1970_s8 = inlined_call_operand.hbm [shape: f32[8,4,256], index: 8, kind: output, shape index: {}]  }
   0x1   :  { %14 = vsyncpa [#allocation6], 0 }
   0x2   :  { %16 = vsyncpa [#allocation6 + $0x1], 0  ;;  %s1522_s27 = smov 0   ;;  %s1524_s28 = smov 0  }
   0x3   :  { %s1526_s29 = smov 0   ;;  %s1528_s30 = smov 0  }
   0x4 LB: > { %s1543_s9 = sadd.s32 4294967295, %s1464_s30   ;;  %s1102_s10 = sadd.s32 4294967294, %s1464_s30   ;;  %s1464_s30 = sphi %s1528_s30, %s1991_s30   ;;  %s1460_s29 = sphi %s1526_s29, %s1990_s29   ;;  %s1456_s28 = sphi %s1524_s28, %s1989_s28   ;;  %s1452_s27 = sphi %s1522_s27, %s1988_s27  }
   0x5   : > { %s1547_s11 = sadd.s32 1, %s1464_s30   ;;  %s202_s12 = sadd.s32 1, %s1460_s29 }
   0x6   : > { %s199_s13 = ssub.s32 %s1464_s30, %s1547_s11  ;;  %p212_p0 = scmp.ne.s32.totalorder %s1460_s29, %s1456_s28 }
   0x7   : > { %p200_p1 = scmp.eq.s32.totalorder %s199_s13, 0  ;;  %p213_p2 = scmp.eq.s32.totalorder %s1543_s9, 7 }
   0x8   : > { %p218_p3 = scmp.ne.s32.totalorder %s1456_s28, %s1452_s27  ;;  %p219_p4 = scmp.eq.s32.totalorder %s1102_s10, 7 }
   0x9   : > { %s1558_s14 = scalar_select %p200_p1, %s1460_s29, %s202_s12  }
   0xa   : > { %p1560_p5 = por %p213_p2, %p212_p0  ;;  %p1564_p6 = por %p219_p4, %p218_p3 }
   0xb   : > { %p1103_p7 = scmp.ge.s32.totalorder %s1464_s30, 1  ;;  %p226_p8 = scmp.lt.s32.totalorder %s1464_s30, 9 }
   0xc   : > { %s1975_s15 = scalar_select %p1560_p5, 1, 0 }
   0xd   : > { %s1976_s16 = scalar_select %p1564_p6, 1, 0 }
   0xe   : > { %p1971_p10 = scmp.eq.s32.totalorder %s1543_s9, 0  ;;  %p1572_p11 = pnand %p1103_p7, %p226_p8 }
   0xf   : > { %s1466_s18 = smov [#allocation4]   ;;  %s1370_s23 = scalar_lea.hbm %s1966_s4, 384 }
  0x10   : > { %s1977_s17 = scalar_select %p1572_p11, 1, 0 }
  0x11   : > { %s248_s19 = sshll.u32 %s1466_s18, 4  ;;  %p1303_p12 = pneg %p1572_p11  ;;  %s249_s19 = int_to_ptr.vmem [resolvable:$true] %s248_s19 }
  0x12   : > { %p1371_p0 = scmp.ne.s32.totalorder %s1966_s4, %s1370_s23  ;;  %p1377_p4 = scmp.lt.u32.totalorder %s1370_s23, %s1966_s4 }
  0x13   : > { %p1580_p13 = pnand %p1971_p10, %p1303_p12 }
  0x15   : > { %p1372_p1 = pneg %p1580_p13 }
  0x17   : > { %p1373_p2 = pnand %p1372_p1, %p1371_p0 }
  0x19   : > { %p1374_p3 = pneg %p1373_p2 }
  0x1b   : > { %p1379_p7 = pnand %p1377_p4, %p1374_p3 }
  0x1d   : > { %1382 = shalt.err (!%p1379_p7)
}
  0x1e   : > { %s1383_s12 = scalar_lea.vmem %s249_s19, 384  ;;  %p1391_p10 = scmp.lt.s32.totalorder %s249_s19, %s249_s19 }
  0x1f   : > { %p1384_p8 = scmp.ne.s32.totalorder %s249_s19, %s1383_s12  ;;  %p1392_p6 = scmp.lt.s32.totalorder %s1383_s12, %s1383_s12 }
  0x21   : > { %p1386_p12 = pnand %p1384_p8, %p1372_p1  ;;  %p1393_p5 = por %p1392_p6, %p1391_p10 }
  0x23   : > { %p1387_p9 = pneg %p1386_p12 }
  0x25   : > { %p1394_p11 = pnand %p1393_p5, %p1387_p9 }
  0x27   : > { %1397 = shalt.err (!%p1394_p11)
}
  0x28   : > { %1306 = dma.hbm_to_vmem [thread:$0]  (!%p1580_p13), %s1966_s4, 384, %s249_s19, [#allocation5]  }
  0x29   : > { %p1979_p0 = scmp.ne.s32.totalorder %s1977_s17, 0 }
  0x2a   : > { %p1980_p2 = scmp.eq.s32.totalorder (!%p1979_p0), %s1543_s9, 0 }
  0x2b   : > { %277 = sbr.rel (%p1979_p0) target bundleno = 1756 (0x6dc), region = 52 }
  0x32   : > { %1443 = dma.done.wait (%p1980_p2), [#allocation5], 384   ;;  %p1981_p1 = pmov %p1980_p2 }
  0x33   : > { %s1974_s21 = sand.u32 1, %s1456_s28   ;;  %p310_p5 = scmp.lt.s32.totalorder %s1543_s9, 7 }
  0x34   : > { %1445 = vsyncadd (%p1981_p1), [#allocation5], 4294966912  ;;  %s1610_s20 = sshll.u32 %s1974_s21, 3  ;;  %p1982_p6 = scmp.ne.s32.totalorder %s1543_s9, 0 }
  0x35   : > { %s311_s19 = scalar_select %p310_p5, %s1543_s9, 7 }
  0x36   : > { %317 = sbr.rel (%p1982_p6) target bundleno = 61 (0x3d), region = 60  ;;  %v318_v0 = vld [vmem:[%s1963_s1] sm:$0xf] (!%p1982_p6)  ;;  %vm319_vm0 = vcmask (!%p1982_p6), 257024  }
  0x37   : > { %s1109_s22 = sshll.u32 %s311_s19, 2  ;;  %v321_v1 = vld [vmem:[%s1964_s2] sm:$0xf] (!%p1982_p6)  ;;  %320 = vst.msk [vmem:[#allocation2] sm:$0xf] (!%p1982_p6), %vm319_vm0, %v318_v0 }
  0x38   : > { %s1616_s24 = scalar_lea.vmem %s1962_s0, %s1109_s22  ;;  %322 = vst.msk [vmem:[#allocation3] sm:$0xf] (!%p1982_p6), %vm319_vm0, %v321_v1 }
  0x3d PF: > { %v325_v2 = vld [vmem:[%s1968_s6] sm:$0xff]  ;;  %v326_v3 = vld [vmem:[%s1968_s6 + $0x8] sm:$0xff]  ;;  %v327_v4 = vld [vmem:[%s1968_s6 + $0x10] sm:$0xff]  ;;  %v1467_v5 = vmov 0.0|0.0   ;;  %vm1468_vm1 = vmmov 0   ;;  %v1469_v8 = vmov 0.0  }
  0x3e   : > { %1215 = vmatprep.subr.bf16.mxu0 %v1467_v5  ;;  %v1216_v6 = vpack.c.bf16 %v326_v3, %v325_v2  ;;  %v328_v7 = vld [vmem:[%s1968_s6 + $0x18] sm:$0xff]  ;;  %1185 = vmatprep.mubr.msk.f32.mxu0 %vm1468_vm1, %v1469_v8  ;;  %v1644_v10 = vld [vmem:[#allocation2] sm:$0xf]  ;;  %vm334_vm2 = vcmask 261120   ;;  %vm408_vm3 = vcmask 60416   ;;  %v421_v16 = vld [vmem:[%s1965_s3 + $0x8] sm:$0xff] }
  0x3f   : > { %516 = vmatprep.mubr.f32.mxu1 %v1469_v8  ;;  %v1219_v9 = vpack.c.bf16 %v328_v7, %v327_v4  ;;  %v1111_v11 = vld [vmem:[%s1968_s6 + $0x20] ss:$0 sm:$0xff]  ;;  %v423_v17 = vld [vmem:[%s1965_s3 + $0x18] sm:$0xff]  ;;  %v422_v20 = vld [vmem:[%s1965_s3 + $0x10] sm:$0xff]  ;;  %s1470_s25 = smov 32   ;;  %vm526_vm4 = vcmask 64512  }
  0x40   : > { %1217 = vmatpush3.bf16.msra.mxu0 %v1216_v6  ;;  %v420_v18 = vld [vmem:[%s1965_s3] sm:$0xff]  ;;  %v1221_v19 = vpack.c.bf16 %v423_v17, %v421_v16  ;;  %v425_v21 = vld [vmem:[%s1965_s3 + $0x28] sm:$0xff]  ;;  %v427_v22 = vld [vmem:[%s1965_s3 + $0x38] sm:$0xff]  ;;  %s1471_s17 = smov 96   ;;  %s1472_s23 = smov 64   ;;  %vm1003_vm5 = vcmask 326656  }
  0x41   : > { %1218 = vmatprep.subr.bf16.mxu0 %v1467_v5  ;;  %v1223_v23 = vpack.c.bf16 %v422_v20, %v420_v18  ;;  %v1225_v24 = vpack.c.bf16 %v427_v22, %v425_v21  ;;  %v424_v25 = vld [vmem:[%s1965_s3 + $0x20] sm:$0xff]  ;;  %v426_v26 = vld [vmem:[%s1965_s3 + $0x30] sm:$0xff]  ;;  %v429_v27 = vld [vmem:[%s1965_s3 + $0x48] sm:$0xff]  ;;  %s1473_s26 = smov 8   ;;  %s1474_s10 = smov 72   ;;  %vm1005_vm6 = vcmask 588800  }
  0x42   : > { %1222 = vmatprep.subr.bf16.mxu1 %v1221_v19  ;;  %v431_v28 = vld [vmem:[%s1965_s3 + $0x58] sm:$0xff]  ;;  %v1227_v29 = vpack.c.bf16 %v426_v26, %v424_v25  ;;  %v428_v31 = vld [vmem:[%s1965_s3 + $0x40] sm:$0xff]  ;;  %v430_v32 = vld [vmem:[%s1965_s3 + $0x50] sm:$0xff]  ;;  %s1475_s21 = smov 104   ;;  %vm978_vm7 = vcmask 257024   ;;  %vm1007_vm8 = vcmask 850944  }
  0x43   : > { %1224 = vmatpush1.bf16.msra.mxu1 %v1223_v23  ;;  %v1229_v30 = vpack.c.bf16 %v431_v28, %v429_v27  ;;  %v433_v33 = vld [vmem:[%s1965_s3 + $0x68] sm:$0xff]  ;;  %v435_v34 = vld [vmem:[%s1965_s3 + $0x78] sm:$0xff]  ;;  %v1231_v35 = vpack.c.bf16 %v430_v32, %v428_v31  ;;  %v432_v37 = vld [vmem:[%s1965_s3 + $0x60] sm:$0xff]  ;;  %p1986_p10 = scmp.ne.s32.totalorder %s1975_s15, 0 }
  0x44   : > { %1220 = vmatpush3.bf16.msra.mxu0 %v1219_v9  ;;  %1226 = vmatprep.subr.bf16.mxu1 %v1225_v24  ;;  %v1233_v36 = vpack.c.bf16 %v435_v34, %v433_v33  ;;  %v434_v38 = vld [vmem:[%s1965_s3 + $0x70] sm:$0xff]  ;;  %v437_v39 = vld [vmem:[%s1965_s3 + $0x88] sm:$0xff]  ;;  %v439_v40 = vld [vmem:[%s1965_s3 + $0x98] sm:$0xff] }
  0x45   : > { %v1235_v41 = vpack.c.bf16 %v434_v38, %v432_v37  ;;  %v1237_v42 = vpack.c.bf16 %v439_v40, %v437_v39  ;;  %v436_v43 = vld [vmem:[%s1965_s3 + $0x80] sm:$0xff]  ;;  %v438_v44 = vld [vmem:[%s1965_s3 + $0x90] sm:$0xff]  ;;  %v441_v51 = vld [vmem:[%s1965_s3 + $0xa8] sm:$0xff] }
  0x46   : > { %v1239_v45 = vpack.c.bf16 %v438_v44, %v436_v43  ;;  %v443_v52 = vld [vmem:[%s1965_s3 + $0xb8] sm:$0xff]  ;;  %v440_v54 = vld [vmem:[%s1965_s3 + $0xa0] sm:$0xff]  ;;  %v442_v55 = vld [vmem:[%s1965_s3 + $0xb0] sm:$0xff] }
  0x47   : > { %1186 = vmatmul.mubr.msk.f32.vlgmr.msra.gmra.mrb[0].mxu0 %vm334_vm2, %v1644_v10  ;;  %1228 = vmatpush1.bf16.msra.mxu1 %v1227_v29  ;;  %v1241_v53 = vpack.c.bf16 %v443_v52, %v441_v51  ;;  %v1243_v56 = vpack.c.bf16 %v442_v55, %v440_v54  ;;  %v445_v57 = vld [vmem:[%s1965_s3 + $0xc8] sm:$0xff]  ;;  %v447_v58 = vld [vmem:[%s1965_s3 + $0xd8] sm:$0xff]  ;;  %v444_v60 = vld [vmem:[%s1965_s3 + $0xc0] sm:$0xff] }
  0x48   : > { %594 = vmatprep.mubr.f32.mxu0 %v1469_v8  ;;  %1230 = vmatprep.subr.bf16.mxu1 %v1229_v30  ;;  %v1245_v59 = vpack.c.bf16 %v447_v58, %v445_v57  ;;  %v446_v61 = vld [vmem:[%s1965_s3 + $0xd0] sm:$0xff]  ;;  %v449_v63 = vld [vmem:[%s1965_s3 + $0xe8] sm:$0xff]  ;;  %v451_v0 = vld [vmem:[%s1965_s3 + $0xf8] sm:$0xff] }
  0x49   : > { %v1247_v62 = vpack.c.bf16 %v446_v61, %v444_v60  ;;  %v1249_v1 = vpack.c.bf16 %v451_v0, %v449_v63  ;;  %v448_v2 = vld [vmem:[%s1965_s3 + $0xe0] sm:$0xff]  ;;  %v450_v3 = vld [vmem:[%s1965_s3 + $0xf0] sm:$0xff]  ;;  %v523_v7 = vld [vmem:[#allocation4] sm:$0xff] }
  0x4a   : > { %v1251_v4 = vpack.c.bf16 %v450_v3, %v448_v2  ;;  %v524_v6 = vld [vmem:[#allocation4 + $0x8] sm:$0xff]  ;;  %v323_v9 = vld [vmem:[%s1616_s24] sm:$0xf]  ;;  %v525_v16 = vld [vmem:[#allocation4 + $0x10] sm:$0xff]  ;;  %s1985_s24 = sand.u32 1, %s1456_s28  }
  0x4b   : > { %1232 = vmatpush1.bf16.msra.mxu1 %v1231_v35  ;;  %530 = vmatprep.subr.mxu0 %v524_v6  ;;  %v673_v18 = vld [vmem:[%s1967_s5] sm:$0xff]  ;;  %v674_v19 = vld [vmem:[%s1967_s5 + $0x8] sm:$0xff]  ;;  %v691_v20 = vld [vmem:[%s1967_s5 + $0x90] sm:$0xff]  ;;  %s1017_s22 = scalar_lea.sflag [#allocation6], %s1985_s24 }
  0x4c   : > { %1234 = vmatprep.subr.bf16.mxu1 %v1233_v36  ;;  %531 = vmatpush1.msra.mxu0 %v523_v7  ;;  %v692_v21 = vld [vmem:[%s1967_s5 + $0x98] sm:$0xff]  ;;  %v1255_v22 = vpack.c.bf16 %v674_v19, %v673_v18  ;;  %v675_v24 = vld [vmem:[%s1967_s5 + $0x10] sm:$0xff]  ;;  %v693_v26 = vld [vmem:[%s1967_s5 + $0xa0] sm:$0xff] }
  0x4d   : > { %1188 = vmatprep.subr.mxu0 %v1469_v8  ;;  %779 = vrot.lane.b32.xlu1 %v323_v9, %s1470_s25  ;;  %v1257_v23 = vpack.c.bf16 %v692_v21, %v691_v20  ;;  %v676_v25 = vld [vmem:[%s1967_s5 + $0x18] sm:$0xff]  ;;  %v694_v27 = vld [vmem:[%s1967_s5 + $0xa8] sm:$0xff]  ;;  %v677_v30 = vld [vmem:[%s1967_s5 + $0x20] sm:$0xff] }
  0x4e   : > { %v1259_v28 = vpack.c.bf16 %v676_v25, %v675_v24  ;;  %v1261_v29 = vpack.c.bf16 %v694_v27, %v693_v26  ;;  %v678_v31 = vld [vmem:[%s1967_s5 + $0x28] sm:$0xff]  ;;  %v695_v32 = vld [vmem:[%s1967_s5 + $0xb0] sm:$0xff]  ;;  %v696_v33 = vld [vmem:[%s1967_s5 + $0xb8] sm:$0xff] }
  0x4f   : > { %1236 = vmatpush1.bf16.msra.mxu1 %v1235_v41  ;;  %v1263_v34 = vpack.c.bf16 %v678_v31, %v677_v30  ;;  %v1265_v35 = vpack.c.bf16 %v696_v33, %v695_v32  ;;  %v679_v36 = vld [vmem:[%s1967_s5 + $0x30] sm:$0xff]  ;;  %v680_v37 = vld [vmem:[%s1967_s5 + $0x38] sm:$0xff]  ;;  %v697_v38 = vld [vmem:[%s1967_s5 + $0xc0] sm:$0xff] }
  0x50   : > { %1238 = vmatprep.subr.bf16.mxu1 %v1237_v42  ;;  %v698_v39 = vld [vmem:[%s1967_s5 + $0xc8] sm:$0xff]  ;;  %v1267_v40 = vpack.c.bf16 %v680_v37, %v679_v36  ;;  %v681_v42 = vld [vmem:[%s1967_s5 + $0x40] sm:$0xff]  ;;  %v699_v44 = vld [vmem:[%s1967_s5 + $0xd0] sm:$0xff] }
  0x51   : > { %v1269_v41 = vpack.c.bf16 %v698_v39, %v697_v38  ;;  %v682_v43 = vld [vmem:[%s1967_s5 + $0x48] sm:$0xff]  ;;  %v685_v54 = vld [vmem:[%s1967_s5 + $0x60] sm:$0xff]  ;;  %v703_v57 = vld [vmem:[%s1967_s5 + $0xf0] sm:$0xff] }
  0x52   : > { %v702_v51 = vld [vmem:[%s1967_s5 + $0xe8] sm:$0xff]  ;;  %v704_v58 = vld [vmem:[%s1967_s5 + $0xf8] sm:$0xff]  ;;  %v687_v61 = vld [vmem:[%s1967_s5 + $0x70] sm:$0xff] }
  0x53   : > { %1240 = vmatpush1.bf16.msra.mxu1 %v1239_v45  ;;  %v700_v45 = vld [vmem:[%s1967_s5 + $0xd8] sm:$0xff]  ;;  %v686_v55 = vld [vmem:[%s1967_s5 + $0x68] sm:$0xff]  ;;  %v1281_v60 = vpack.c.bf16 %v704_v58, %v703_v57  ;;  %v789_v21 = vld [vmem:[%s1969_s7] sm:$0xff] }
  0x54   : > { %1242 = vmatprep.subr.bf16.mxu1 %v1241_v53  ;;  %v788_v25 = vld [vmem:[#allocation3] sm:$0xf] }
  0x57   : > { %1244 = vmatpush1.bf16.msra.mxu1 %v1243_v56  ;;  %v1279_v56 = vpack.c.bf16 %v686_v55, %v685_v54 }
  0x58   : > { %1246 = vmatprep.subr.bf16.mxu1 %v1245_v59 }
  0x5b   : > { %1248 = vmatpush1.bf16.msra.mxu1 %v1247_v62  ;;  %v688_v62 = vld [vmem:[%s1967_s5 + $0x78] sm:$0xff] }
  0x5c   : > { %1250 = vmatprep.subr.bf16.mxu1 %v1249_v1  ;;  %v1283_v0 = vpack.c.bf16 %v688_v62, %v687_v61 }
  0x5f   : > { %1252 = vmatpush1.bf16.msra.mxu1 %v1251_v4 }
  0x60   : > { %1285 = vmatprep.subr.bf16.mxu1 %v1467_v5 }
  0x62   : > { %517 = vmatmul.mubr.f32.vlgmr.msra.gmra.mrb[0].mxu1 %v323_v9 }
  0x63   : > { %1201 = vmatprep.mubr.msk.f32.mxu1 %vm1468_vm1, %v1469_v8 }
  0xbf   : > { %v780_v18 = vpop.permute.xlu1 %779 }
 0x11a   : > { %v404_v12 = vpop.f32.mrb[0].mxu0 }
 0x11b   : > { %v405_v13 = vadd.f32 %v1111_v11, %v404_v12  ;;  %v1187_v14 = vpop.f32.mrb[1].mxu0  ;;  %v689_v12 = vld [vmem:[%s1967_s5 + $0x80] sm:$0xff] }
 0x11d   : > { %v409_v15 = vsel %vm408_vm3, %v405_v13, -inf }
 0x11e   : > { %410 = vmax.xlane.f32.xlu0 %v409_v15 }
 0x135   : > { %v518_v59 = vpop.f32.mrb[0].mxu1 }
 0x136   : > { %v520_v63 = vpop.f32.mrb[1].mxu1 }
 0x1ab   : > { %v411_v46 = vpop.xlane.xlu0 %410 }
 0x1ac   : > { %v412_v47 = vsub.f32 %v405_v13, %v411_v46  ;;  %v690_v13 = vld [vmem:[%s1967_s5 + $0x88] sm:$0xff]  ;;  %v1271_v46 = vpack.c.bf16 %v682_v43, %v681_v42 }
 0x1ad   : > { %v1253_v17 = vpack.c.bf16 %v690_v13, %v689_v12  ;;  %v794_v12 = vld [vmem:[%s1969_s7 + $0x28] sm:$0xff]  ;;  %v795_v13 = vld [vmem:[%s1969_s7 + $0x30] sm:$0xff] }
 0x1ae   : > { %v413_v48 = vmul.f32 1.442695, %v412_v47  ;;  %v1273_v47 = vpack.c.bf16 %v700_v45, %v699_v44 }
 0x1b0   : > { %1356 = vpow2.f32 %v413_v48  ;;  %v683_v48 = vld [vmem:[%s1967_s5 + $0x50] sm:$0xff] }
 0x1ba   : > { %v1357_v49 = vpop.eup %1356 }
 0x1bb   : > { %v415_v50 = vsel %vm408_vm3, %v1357_v49, 0.0 }
 0x1bc   : > { %416 = vadd.xlane.f32.xlu0 %v415_v50  ;;  %v701_v50 = vld [vmem:[%s1967_s5 + $0xe0] sm:$0xff] }
 0x1bd   : > { %v1277_v53 = vpack.c.bf16 %v702_v51, %v701_v50 }
 0x249   : > { %v417_v11 = vpop.xlane.xlu0 %416 }
 0x24a   : > { %1358 = vrcp.f32 %v417_v11  ;;  %v793_v11 = vld [vmem:[%s1969_s7 + $0x20] sm:$0xff] }
 0x254   : > { %v1359_v14 = vpop.eup %1358 }
 0x255   : > { %v1762_v15 = vmul.f32 %v1359_v14, %v1357_v49  ;;  %v684_v49 = vld [vmem:[%s1967_s5 + $0x58] sm:$0xff]  ;;  %v1286_v14 = vpack.c.bf16 %v794_v12, %v793_v11 }
 0x256   : > { %v1275_v52 = vpack.c.bf16 %v684_v49, %v683_v48 }
 0x257   : > { %1113 = vmatmul.mubr.msk.f32.vlgmr.msra.gmra.mrb[2].mxu0 %vm526_vm4, %v1762_v15  ;;  %1287 = vmatpush3.bf16.msra.mxu1 %v1286_v14 }
 0x258   : > { %1189 = vmatpush3.msra.mxu0 %v525_v16  ;;  %1190 = vmatprep.mubr.msk.f32.mxu0 %vm1468_vm1, %v1469_v8  ;;  %v796_v16 = vld [vmem:[%s1969_s7 + $0x38] sm:$0xff] }
 0x259   : > { %1254 = vmatprep.subr.bf16.mxu0 %v1253_v17  ;;  %v1289_v17 = vpack.c.bf16 %v796_v16, %v795_v13  ;;  %1288 = vmatprep.subr.bf16.mxu1 %v1467_v5 }
 0x25b   : > { %1191 = vmatmul.mubr.msk.f32.vlgmr.msra.gmra.mrb[4].mxu0 %vm526_vm4, %v1762_v15  ;;  %1290 = vmatpush3.bf16.msra.mxu1 %v1289_v17 }
 0x25c   : > { %1256 = vmatpush3.bf16.msra.mxu0 %v1255_v22  ;;  %1291 = vmatprep.subr.bf16.mxu1 %v1467_v5  ;;  %v790_v22 = vld [vmem:[%s1969_s7 + $0x8] sm:$0xff] }
 0x25d   : > { %1258 = vmatprep.subr.bf16.mxu0 %v1257_v23  ;;  %v1292_v23 = vpack.c.bf16 %v790_v22, %v789_v21 }
 0x25e   : > { %1202 = vmatmul.mubr.msk.f32.vlgmr.msra.gmra.mrb[2].mxu1 %vm334_vm2, %v1644_v10  ;;  %v792_v10 = vld [vmem:[%s1969_s7 + $0x18] sm:$0xff] }
 0x25f   : > { %1212 = vmatprep.mubr.msk.f32.mxu1 %vm1468_vm1, %v1469_v8  ;;  %1293 = vmatpush3.bf16.msra.mxu1 %v1292_v23  ;;  %v791_v8 = vld [vmem:[%s1969_s7 + $0x10] sm:$0xff] }
 0x260   : > { %1260 = vmatpush3.bf16.msra.mxu0 %v1259_v28  ;;  %1294 = vmatprep.subr.bf16.mxu1 %v1467_v5  ;;  %v1295_v24 = vpack.c.bf16 %v792_v10, %v791_v8 }
 0x261   : > { %1262 = vmatprep.subr.bf16.mxu0 %v1261_v29 }
 0x263   : > { %1296 = vmatpush3.bf16.msra.mxu1 %v1295_v24 }
 0x264   : > { %1264 = vmatpush3.bf16.msra.mxu0 %v1263_v34  ;;  %v1117_v34 = vld [vmem:[%s1969_s7 + $0x40] ss:$0 sm:$0xff] }
 0x265   : > { %1266 = vmatprep.subr.bf16.mxu0 %v1265_v35 }
 0x268   : > { %1268 = vmatpush3.bf16.msra.mxu0 %v1267_v40 }
 0x269   : > { %1270 = vmatprep.subr.bf16.mxu0 %v1269_v41 }
 0x26c   : > { %1272 = vmatpush3.bf16.msra.mxu0 %v1271_v46 }
 0x26d   : > { %1274 = vmatprep.subr.bf16.mxu0 %v1273_v47 }
 0x270   : > { %1276 = vmatpush3.bf16.msra.mxu0 %v1275_v52 }
 0x271   : > { %1278 = vmatprep.subr.bf16.mxu0 %v1277_v53 }
 0x274   : > { %1280 = vmatpush3.bf16.msra.mxu0 %v1279_v56 }
 0x275   : > { %1282 = vmatprep.subr.bf16.mxu0 %v1281_v60 }
 0x278   : > { %1284 = vmatpush3.bf16.msra.mxu0 %v1283_v0 }
 0x32a   : > { %v596_v1 = vpop.f32.mrb[2].mxu0 }
 0x32b   : > { %v671_v2 = vmul.f32 %v596_v1, %v518_v59  ;;  %v598_v3 = vpop.f32.mrb[3].mxu0 }
 0x32c   : > { %v672_v4 = vmul.f32 %v598_v3, %v520_v63 }
 0x32e   : > { %v1860_v6 = vpop.f32.mrb[4].mxu0  ;;  %769 = vmatprep.mubr.f32.mxu0 %v672_v4 }
 0x32f   : > { %v776_v7 = vmul.f32 1.442695, %v1860_v6  ;;  %v1192_v9 = vpop.f32.mrb[5].mxu0  ;;  %770 = vmatmul.mubr.f32.vlgmr.msra.gmra.mrb[6].mxu0 %v671_v2 }
 0x331   : > { %1360 = vpow2.f32 %v776_v7  ;;  %v863_v31 = vpop.f32.mrb[2].mxu1 }
 0x332   : > { %v1203_v32 = vpop.f32.mrb[3].mxu1 }
 0x33b   : > { %v1361_v19 = vpop.eup %1360 }
 0x33c   : > { %v782_v20 = vmul.f32 %v1361_v19, %v780_v18 }
 0x33e   : > { %784 = vrot.lane.b32.xlu1 %v782_v20, %s1471_s17 }
 0x342   : > { %954 = vrot.lane.b32.xlu1 %v788_v25, %s1470_s25 }
 0x3b0   : > { %v785_v30 = vpop.permute.xlu1 %784 }
 0x3b4   : > { %v955_v45 = vpop.permute.xlu1 %954 }
 0x402   : > { %v1164_v26 = vpop.f32.mrb[6].mxu0 }
 0x403   : > { %v1165_v27 = vpop.f32.mrb[7].mxu0 }
 0x404   : > { %v1166_v28 = vadd.f32 %v1165_v27, %v1164_v26 }
 0x406   : > { %v775_v29 = vadd.f32 %v1166_v28, %v1860_v6 }
 0x408   : > { %v787_v5 = vadd.f32 %v785_v30, %v775_v29 }
 0x40a   : > { %1213 = vmatmul.mubr.msk.f32.vlgmr.msra.gmra.mrb[4].mxu1 %vm334_vm2, %v787_v5 }
 0x4dd   : > { %v936_v33 = vpop.f32.mrb[4].mxu1 }
 0x4de   : > { %v937_v35 = vadd.f32 %v936_v33, %v863_v31  ;;  %v1214_v36 = vpop.f32.mrb[5].mxu1 }
 0x4e0   : > { %v945_v37 = vadd.f32 %v1117_v34, %v937_v35 }
 0x4e2   : > { %1362 = vtanh.f32 %v945_v37  ;;  %v1118_v39 = vmul.f32 -1.442695, %v945_v37 }
 0x4e4   : > { %1364 = vpow2.f32 %v1118_v39 }
 0x4ec   : > { %v1363_v38 = vpop.eup %1362 }
 0x4ed   : > { %959 = vrot.lane.b32.xlu0 %v1363_v38, %s1472_s23 }
 0x4ee   : > { %v1365_v40 = vpop.eup %1364 }
 0x4ef   : > { %v949_v41 = vadd.f32 1.0, %v1365_v40 }
 0x4f1   : > { %1366 = vrcp.f32 %v949_v41 }
 0x4fb   : > { %v1367_v42 = vpop.eup %1366 }
 0x4fc   : > { %v957_v46 = vmul.f32 %v1367_v42, %v955_v45 }
 0x55f   : > { %v960_v43 = vpop.permute.xlu0 %959 }
 0x560   : > { %v962_v44 = vmul.f32 %v1367_v42, %v960_v43 }
 0x562   : > { %964 = vrot.lane.b32.xlu1 %v962_v44, %s1470_s25 }
 0x5d4   : > { %v965_v47 = vpop.permute.xlu1 %964 }
 0x5d5   : > { %v967_v48 = vadd.f32 %v965_v47, %v957_v46 }
 0x5d7   : > { %1368 = vtanh.f32 %v967_v48 }
 0x5e1   : > { %v1369_v49 = vpop.eup %1368 }
 0x5e2   : > { %970 = vrot.lane.b32.xlu1 %v1369_v49, %s1472_s23 }
 0x5e6   : > { %986 = vrot.lane.b32.xlu1 %v775_v29, %s1473_s26 }
 0x5ea   : > { %990 = vrot.lane.b32.xlu1 %v1860_v6, %s1473_s26 }
 0x5ee   : > { %993 = vrot.lane.b32.xlu1 %v787_v5, %s1474_s10 }
 0x5f2   : > { %999 = vrot.lane.b32.xlu1 %v967_v48, %s1475_s21 }
 0x5f6   : > { %981 = vrot.lane.b32.xlu1 %v967_v48, %s1471_s17  ;;  %s1124_s17 = sshll.u32 %s1543_s9, 7 }
 0x5f7   : > { %s1916_s19 = scalar_lea.hbm %s1970_s8, %s1124_s17 }
 0x654   : > { %v971_v50 = vpop.permute.xlu1 %970 }
 0x655   : > { %v973_v51 = vmul.f32 %v1367_v42, %v971_v50 }
 0x657   : > { %996 = vrot.lane.b32.xlu0 %v973_v51, %s1473_s26  ;;  %s1476_s26 = smov [#allocation7]  }
 0x658   : > { %v987_v52 = vpop.permute.xlu1 %986  ;;  %s1402_s10 = sshll.u32 %s1476_s26, 4  ;;  %s1403_s10 = int_to_ptr.vmem [resolvable:$false] %s1402_s10 }
 0x659   : > { %v1002_v53 = vsel %vm526_vm4, %v1762_v15, %v987_v52  ;;  %s1404_s21 = scalar_lea.vmem %s1403_s10, 256 }
 0x65b   : > { %975 = vrot.lane.b32.xlu0 %v973_v51, %s1470_s25  ;;  %s1983_s25 = scalar_lea.vmem [#allocation7], %s1610_s20 }
 0x65c   : > { %v991_v54 = vpop.permute.xlu1 %990  ;;  %s1031_s12 = sshll.u32 %s1983_s25, 4  ;;  %s1984_s9 = smov %s1983_s25  ;;  %s1918_s12 = int_to_ptr.vmem [resolvable:$true] %s1031_s12 }
 0x65d   : > { %v1004_v55 = vsel %vm1003_vm5, %v1002_v53, %v991_v54  ;;  %s1398_s23 = scalar_lea.vmem %s1918_s12, 128  ;;  %p1405_p3 = scmp.lt.s32.totalorder %s1918_s12, %s1403_s10 }
 0x65e   : > { %p1399_p9 = scmp.ne.s32.totalorder %s1918_s12, %s1398_s23  ;;  %p1406_p4 = scmp.lt.s32.totalorder %s1404_s21, %s1398_s23 }
 0x660   : > { %v994_v56 = vpop.permute.xlu1 %993  ;;  %p1400_p11 = pnand %p1399_p9, %p1986_p10  ;;  %p1407_p7 = por %p1406_p4, %p1405_p3 }
 0x661   : > { %v1006_v57 = vsel %vm1005_vm6, %v1004_v55, %v994_v56 }
 0x662   : > { %p1401_p13 = pneg %p1400_p11 }
 0x664   : > { %v1000_v58 = vpop.permute.xlu1 %999  ;;  %p1408_p8 = pnand %p1407_p7, %p1401_p13 }
 0x668   : > { %v982_v59 = vpop.permute.xlu1 %981 }
 0x669   : > { %984 = vst.msk [vmem:[#allocation3] sm:$0xf] %vm978_vm7, %v982_v59 }
 0x6c9   : > { %v997_v60 = vpop.permute.xlu0 %996 }
 0x6ca   : > { %v1008_v61 = vsel %vm1007_vm8, %v1006_v57, %v997_v60  ;;  %v1009_v15 = vsel %vm526_vm4, %v997_v60, %v1000_v58 }
 0x6cb   : > { %v1010_v62 = vsel %vm1003_vm5, %v1009_v15, 0.0 }
 0x6cc   : > { %v1013_v63 = vcombine.low %v1008_v61, %v1010_v62 }
 0x6cd   : > { %v976_v0 = vpop.permute.xlu0 %975 }
 0x6ce   : > { %1015 = vst [vmem:[%s1984_s9] sm:$0xff] %v1013_v63  ;;  %979 = vst.msk [vmem:[#allocation2] sm:$0xf] %vm978_vm7, %v976_v0 }
 0x6cf   : > { %1411 = shalt.err (!%p1408_p8)
}
 0x6d0   : > { %s1412_s20 = scalar_lea.hbm %s1916_s19, 128  ;;  %s1416_s13 = scalar_lea.hbm %s1970_s8, 1024 }
 0x6d1   : > { %p1413_p12 = scmp.ne.s32.totalorder %s1916_s19, %s1412_s20  ;;  %p1417_p1 = scmp.lt.u32.totalorder %s1916_s19, %s1970_s8 }
 0x6d2   : > { %p1418_p5 = scmp.lt.u32.totalorder %s1416_s13, %s1412_s20  ;;  %p1420_p9 = scmp.lt.u32.totalorder %s1412_s20, %s1916_s19 }
 0x6d3   : > { %p1414_p0 = pnand %p1413_p12, %p1986_p10 }
 0x6d4   : > { %p1419_p6 = por %p1418_p5, %p1417_p1 }
 0x6d5   : > { %p1415_p2 = pneg %p1414_p0 }
 0x6d6   : > { %p1421_p11 = por %p1420_p9, %p1419_p6 }
 0x6d8   : > { %p1422_p13 = pnand %p1421_p11, %p1415_p2 }
 0x6da   : > { %1425 = shalt.err (!%p1422_p13)
}
 0x6db   : > { %1301 = dma.vmem_to_hbm [thread:$0]  (%p1986_p10), %s1918_s12, 128, %s1916_s19, %s1017_s22  }
 0x6dc PF: > { %p1313_p3 = scmp.ge.s32.totalorder %s1464_s30, 2  ;;  %s1043_s24 = sand.u32 1, %s1452_s27  }
 0x6dd   : > { %p1987_p4 = scmp.ne.s32.totalorder %s1976_s16, 0  ;;  %s1044_s23 = scalar_lea.sflag [#allocation6], %s1043_s24 }
 0x6df   : > { %p1308_p7 = pnand %p1313_p3, %p1987_p4 }
 0x6e1   : > { %1447 = dma.done.wait (!%p1308_p7), %s1044_s23, 128  }
 0x6e2   : > { %1449 = vsyncadd (!%p1308_p7), %s1044_s23, 4294967168  ;;  %p19_p8 = scmp.ge.s32.totalorder %s1547_s11, 10   ;;  %s1988_s27 = smov %s1456_s28 }
 0x6e3   : > { %s1989_s28 = smov %s1460_s29  ;;  %s1990_s29 = smov %s1558_s14 }
 0x6e4   : > { %s1991_s30 = smov %s1547_s11  ;;  %21 = sbr.rel (!%p19_p8) target bundleno = 4 (0x4), region = 96 }
 0x6eb   :  { %1049 = vsyncpa [#allocation5], 1 }
 0x6ec   :  { %1051 = vsyncpa [#allocation5 + $0x1], 1 }
 0x6ed   :  { %1052 = vsyncpa [#allocation6], 1 }
 0x6ee   :  { %1054 = vsyncpa [#allocation6 + $0x1], 1 }

</bundles_post_ra>
